<compile_context>
chip_gen: v7x
topology: tpu7x:2x2x1
jax: 0.10.0
libtpu: 0.0.40
codegen_flags: <defaults>
</compile_context>

<pallas_src>
import jax
import jax.numpy as jnp
from jax import lax
from jax.experimental import pallas as pl
from jax.experimental.pallas import tpu as pltpu


def _svm_kernel(x_ref, w_ref, b_ref, o_ref):
    # x_ref: [TILE_B, F]  batch tile (VMEM, auto double-buffered)
    # w_ref: [1, F]       weight row (VMEM, resident across grid steps)
    # b_ref: [1, 1]       bias scalar (SMEM)
    # o_ref: [1, TILE_B]  lane-dense output slab
    y = lax.dot_general(
        w_ref[...], x_ref[...],
        dimension_numbers=(((1,), (1,)), ((), ())),   # contract over features
        preferred_element_type=jnp.float32,
    )                                                 # -> [1, TILE_B] f32
    y = y + b_ref[0, 0]                               # scalar bias from SMEM
    o_ref[...] = jnp.maximum(y, 0.0).astype(o_ref.dtype)


def svm_forward(x, weight, bias, *, tile_b=4096):
    """relu(x @ weight.T + bias).

    x:      [B, F] (kept in its native dtype through the DMA)
    weight: [1, F] (PyTorch nn.Linear layout)
    bias:   [1]
    returns [B, 1]
    """
    B, F = x.shape
    itemsize = jnp.dtype(x.dtype).itemsize
    out_dtype = jnp.promote_types(x.dtype, weight.dtype)
    out_itemsize = jnp.dtype(out_dtype).itemsize

    # Lane-padded width of one x row as it will sit in VMEM (e.g. 30 -> 128).
    f_lanes = ((F + 127) // 128) * 128

    # Don't tile far past the batch (limits padding for tiny batches); keep a
    # multiple of 128 so the output slab stays lane-dense / unmasked.
    b_ceil = ((B + 127) // 128) * 128
    tile_b = max(128, min(tile_b, b_ceil))
    tile_b = (tile_b // 128) * 128

    # Shrink until the double-buffered x tile fits comfortably in VMEM
    # (v7x has only 64 MiB per core; leave generous headroom).
    while tile_b > 128 and 2 * tile_b * f_lanes * itemsize > (16 << 20):
        tile_b //= 2

    num_tiles = pl.cdiv(B, tile_b)
    b_pad = num_tiles * tile_b

    # Pad ONLY the batch dim, and only when needed (zero rows are exact: they
    # just produce extra output lanes that get sliced off).
    x_p = x if b_pad == B else jnp.pad(x, ((0, b_pad - B), (0, 0)))
    w_row = weight.reshape(1, F).astype(x.dtype)
    b_smem = bias.reshape(1, 1).astype(jnp.float32)

    # Conservative VMEM budget: double-buffered x tile + resident weight row
    # + double-buffered output slab, with headroom; always <= 32 MiB.
    vmem_bytes = (2 * tile_b * f_lanes * itemsize
                  + 2 * f_lanes * itemsize
                  + 2 * tile_b * out_itemsize)
    vmem_limit = int(min(max(4 * vmem_bytes, 4 << 20), 32 << 20))

    cost = pl.CostEstimate(
        flops=2 * b_pad * F,
        transcendentals=0,
        bytes_accessed=(b_pad * F * itemsize + F * itemsize
                        + b_pad * out_itemsize + 4),
    )

    out = pl.pallas_call(
        _svm_kernel,
        out_shape=jax.ShapeDtypeStruct((1, b_pad), out_dtype),
        grid=(num_tiles,),
        in_specs=[
            # x: one batch tile per grid step (full feature extent, no pad).
            pl.BlockSpec((tile_b, F), lambda i: (i, 0)),
            # weight row: same block every step -> stays resident in VMEM.
            pl.BlockSpec((1, F), lambda i: (0, 0)),
            # bias: scalar in SMEM, no VMEM tile.
            pl.BlockSpec(memory_space=pltpu.MemorySpace.SMEM),
        ],
        # Lane-dense output: tile i writes lanes [i*tile_b, (i+1)*tile_b).
        out_specs=pl.BlockSpec((1, tile_b), lambda i: (0, i)),
        compiler_params=pltpu.CompilerParams(
            dimension_semantics=("parallel",),
            vmem_limit_bytes=vmem_limit,
        ),
        cost_estimate=cost,
    )(x_p, w_row, b_smem)

    # Drop batch padding and restore the PyTorch-style [B, 1] column.
    return out[0, :B].reshape(B, 1)


if __name__ == "__main__":
    # Breast-cancer dataset has 30 features; small batch for the demo.
    batch, n_features = 8, 30

    key = jax.random.PRNGKey(0)
    kx, kw, kb = jax.random.split(key, 3)

    # Deterministic params (nn.Linear shapes: weight [1, F], bias [1]).
    bound = 1.0 / jnp.sqrt(jnp.float32(n_features))
    weight = jax.random.uniform(kw, (1, n_features), jnp.float32, -bound, bound)
    bias = jax.random.uniform(kb, (1,), jnp.float32, -bound, bound)

    x = jax.random.normal(kx, (batch, n_features), jnp.float32)

    out = svm_forward(x, weight, bias)
    jax.block_until_ready(out)

    # Reference: relu(x @ W.T + b), same semantics as the PyTorch module.
    ref = jnp.maximum(x @ weight.T + bias, 0.0)
    assert out.shape == (batch, 1)
    assert jnp.allclose(out, ref, atol=1e-5, rtol=1e-5)

    print("KERNEL_OK")
</pallas_src>

<mosaic_0001>
module attributes {stable_mosaic.version = 11 : i64} {
  func.func @_svm_kernel(%arg0: i32, %arg1: memref<128x30xf32, #tpu.memory_space<vmem>>, %arg2: memref<1x30xf32, #tpu.memory_space<vmem>>, %arg3: memref<1x1xf32, #tpu.memory_space<smem>>, %arg4: memref<1x128xf32, #tpu.memory_space<vmem>>) attributes {dimension_semantics = [#tpu.dimension_semantics<parallel>], iteration_bounds = array<i64: 1>, scalar_prefetch = 0 : i64, scratch_operands = 0 : i64, tpu.core_type = #tpu.core_type<tc>, window_params = [{transform_indices = @transform_0, window_bounds = array<i64: 128, 30>}, {pipeline_mode = #tpu.pipeline_mode<synchronous>, transform_indices = @transform_1, window_bounds = array<i64: 1, 30>}, {transform_indices = @transform_2, window_bounds = array<i64: 1, 1>}, {transform_indices = @transform_3, window_bounds = array<i64: 1, 128>}]} {
    %c0 = arith.constant 0 : index
    %c0_0 = arith.constant 0 : index
    %0 = vector.load %arg2[%c0, %c0_0] : memref<1x30xf32, #tpu.memory_space<vmem>>, vector<1x30xf32>
    %c0_1 = arith.constant 0 : index
    %c0_2 = arith.constant 0 : index
    %1 = vector.load %arg1[%c0_1, %c0_2] : memref<128x30xf32, #tpu.memory_space<vmem>>, vector<128x30xf32>
    %cst = arith.constant dense<0.000000e+00> : vector<1x128xf32>
    %2 = tpu.matmul %0, %1, %cst {dimension_numbers = #tpu.dot_dimension_numbers<[1], [1], [0], [0], [0, 0, 1, 0], [], []>} : vector<1x30xf32>, vector<128x30xf32>, vector<1x128xf32> -> vector<1x128xf32>
    %c0_3 = arith.constant 0 : index
    %c0_4 = arith.constant 0 : index
    %3 = memref.load %arg3[%c0_3, %c0_4] : memref<1x1xf32, #tpu.memory_space<smem>>
    %4 = vector.broadcast %3 : f32 to vector<1x128xf32>
    %5 = arith.addf %2, %4 : vector<1x128xf32>
    %cst_5 = arith.constant 0.000000e+00 : f32
    %6 = vector.broadcast %cst_5 : f32 to vector<1x128xf32>
    %7 = arith.maximumf %5, %6 : vector<1x128xf32>
    %c0_6 = arith.constant 0 : index
    %c0_7 = arith.constant 0 : index
    %8 = vector.load %arg4[%c0_6, %c0_7] : memref<1x128xf32, #tpu.memory_space<vmem>>, vector<1x128xf32>
    tpu.vector_store %arg4[%c0_6, %c0_7], %7 {strides = array<i32>} : memref<1x128xf32, #tpu.memory_space<vmem>>, vector<1x128xf32>,
    return
  }
  func.func @transform_0(%arg0: i32) -> (i32, i32) {
    %c0_i32 = arith.constant 0 : i32
    %c0_i32_0 = arith.constant 0 : i32
    return %arg0, %c0_i32 : i32, i32
  }
  func.func @transform_1(%arg0: i32) -> (i32, i32) {
    %c0_i32 = arith.constant 0 : i32
    %c0_i32_0 = arith.constant 0 : i32
    %c0_i32_1 = arith.constant 0 : i32
    return %c0_i32, %c0_i32_0 : i32, i32
  }
  func.func @transform_2(%arg0: i32) -> (i32, i32) {
    %c0_i32 = arith.constant 0 : i32
    %c0_i32_0 = arith.constant 0 : i32
    %c0_i32_1 = arith.constant 0 : i32
    return %c0_i32, %c0_i32_0 : i32, i32
  }
  func.func @transform_3(%arg0: i32) -> (i32, i32) {
    %c0_i32 = arith.constant 0 : i32
    %c0_i32_0 = arith.constant 0 : i32
    return %c0_i32, %arg0 : i32, i32
  }
}

</mosaic_0001>

<bundles_post_ra>
// kernel: tpu_custom_call.1
= control target key start
LH: loop header
LB: loop body
LE: loop exit
PB: predicated region body
PF: predicated region fallthrough
CT: control target
= control target key end

     0   :  { %vm35_vm0 = vcmask 244736   ;;  %v302_v2 = vmov 0.0|0.0   ;;  %vm303_vm2 = vmmov 0   ;;  %v304_v5 = vmov 0.0   ;;  %s415_s0 = inlined_call_operand.vmem [shape: f32[128,30], index: 0, kind: input, shape index: {}]   ;;  %s416_s1 = inlined_call_operand.vmem [shape: f32[1,30], index: 1, kind: input, shape index: {}]   ;;  %s417_s2 = inlined_call_operand.<no memory space> [shape: f32[1,1], index: 2, kind: input, shape index: {}]   ;;  %s418_s3 = inlined_call_operand.hbm [shape: f32[1,128], index: 3, kind: output, shape index: {}]  }
   0x1   :  { %v17_v0 = vld [vmem:[%s415_s0] sm:$0xff]  ;;  %v18_v1 = vld [vmem:[%s415_s0 + $0x8] sm:$0xff]  ;;  %242 = vmatprep.subr.bf16.mxu0 %v302_v2  ;;  %vm334_vm1 = vmpackc.low %vm35_vm0, %vm35_vm0  ;;  %239 = vmatprep.mubr.msk.f32.mxu0 %vm303_vm2, %v304_v5 }
   0x2   :  { %v243_v3 = vpack.c.bf16 %v18_v1, %v17_v0  ;;  %v19_v6 = vld [vmem:[%s415_s0 + $0x10] sm:$0xff]  ;;  %v20_v7 = vld [vmem:[%s415_s0 + $0x18] sm:$0xff] }
   0x4   :  { %245 = vmatpush3.bf16.xpose.msk.msra.mxu0 %vm334_vm1, %v243_v3 }
   0x5   :  { %246 = vmatprep.subr.bf16.mxu0 %v302_v2 }
   0x6   :  { %9 = vsyncpa [#allocation4], 0  ;;  %v247_v8 = vpack.c.bf16 %v20_v7, %v19_v6  ;;  %v21_v9 = vld [vmem:[%s415_s0 + $0x20] sm:$0xff]  ;;  %v22_v10 = vld [vmem:[%s415_s0 + $0x28] sm:$0xff]  ;;  %v34_v28 = vstv %s417_s2  ;;  %s305_s21 = smov [#allocation3]  }
   0x7   :  { %v251_v11 = vpack.c.bf16 %v22_v10, %v21_v9  ;;  %v23_v12 = vld [vmem:[%s415_s0 + $0x30] sm:$0xff]  ;;  %v24_v13 = vld [vmem:[%s415_s0 + $0x38] sm:$0xff]  ;;  %v25_v15 = vld [vmem:[%s415_s0 + $0x40] sm:$0xff]  ;;  %s165_s22 = sshll.u32 %s305_s21, 4  ;;  %s166_s22 = int_to_ptr.vmem [resolvable:$true] %s165_s22 }
   0x8   :  { %v255_v14 = vpack.c.bf16 %v24_v13, %v23_v12  ;;  %v26_v16 = vld [vmem:[%s415_s0 + $0x48] sm:$0xff]  ;;  %v27_v18 = vld [vmem:[%s415_s0 + $0x50] sm:$0xff]  ;;  %v28_v19 = vld [vmem:[%s415_s0 + $0x58] sm:$0xff]  ;;  %s282_s23 = scalar_lea.vmem %s166_s22, 32  ;;  %p283_p1 = scmp.lt.s32.totalorder %s166_s22, %s166_s22 }
   0x9   :  { %v259_v17 = vpack.c.bf16 %v26_v16, %v25_v15  ;;  %v263_v20 = vpack.c.bf16 %v28_v19, %v27_v18  ;;  %v29_v21 = vld [vmem:[%s415_s0 + $0x60] sm:$0xff]  ;;  %v30_v22 = vld [vmem:[%s415_s0 + $0x68] sm:$0xff]  ;;  %v31_v24 = vld [vmem:[%s415_s0 + $0x70] sm:$0xff] }
   0xa   :  { %v267_v23 = vpack.c.bf16 %v30_v22, %v29_v21  ;;  %v32_v25 = vld [vmem:[%s415_s0 + $0x78] sm:$0xff]  ;;  %v16_v27 = vld [vmem:[%s416_s1] sm:$0x1]  ;;  %s278_s0 = scalar_lea.vmem %s166_s22, 16 }
   0xb   :  { %v271_v26 = vpack.c.bf16 %v32_v25, %v31_v24  ;;  %p279_p0 = scmp.ne.s32.totalorder %s166_s22, %s278_s0  ;;  %p284_p2 = scmp.lt.s32.totalorder %s282_s23, %s278_s0 }
   0xc   :  { %249 = vmatpush3.bf16.xpose.msk.msra.mxu0 %vm334_vm1, %v247_v8 }
   0xd   :  { %250 = vmatprep.subr.bf16.mxu0 %v302_v2  ;;  %p285_p3 = por %p284_p2, %p283_p1 }
   0xf   :  { %p286_p4 = pnand %p285_p3, %p279_p0 }
  0x14   :  { %253 = vmatpush3.bf16.xpose.msk.msra.mxu0 %vm334_vm1, %v251_v11 }
  0x15   :  { %254 = vmatprep.subr.bf16.mxu0 %v302_v2 }
  0x1c   :  { %257 = vmatpush3.bf16.xpose.msk.msra.mxu0 %vm334_vm1, %v255_v14 }
  0x1d   :  { %258 = vmatprep.subr.bf16.mxu0 %v302_v2 }
  0x24   :  { %261 = vmatpush3.bf16.xpose.msk.msra.mxu0 %vm334_vm1, %v259_v17 }
  0x25   :  { %262 = vmatprep.subr.bf16.mxu0 %v302_v2 }
  0x2c   :  { %265 = vmatpush3.bf16.xpose.msk.msra.mxu0 %vm334_vm1, %v263_v20 }
  0x2d   :  { %266 = vmatprep.subr.bf16.mxu0 %v302_v2 }
  0x34   :  { %269 = vmatpush3.bf16.xpose.msk.msra.mxu0 %vm334_vm1, %v267_v23 }
  0x35   :  { %270 = vmatprep.subr.bf16.mxu0 %v302_v2 }
  0x3c   :  { %273 = vmatpush3.bf16.xpose.msk.msra.mxu0 %vm334_vm1, %v271_v26 }
  0x43   :  { %240 = vmatmul.mubr.msk.f32.vlgmr.msra.gmra.mrb[0].mxu0 %vm35_vm0, %v16_v27 }
 0x116   :  { %v153_v29 = vpop.f32.mrb[0].mxu0 }
 0x117   :  { %v154_v30 = vadd.f32 %v153_v29, %v34_v28  ;;  %v241_v31 = vpop.f32.mrb[1].mxu0 }
 0x119   :  { %v157_v32 = vmax.f32 %v154_v30, 0.0 }
 0x11b   :  { %158 = vst [vmem:[#allocation3] sm:$0x1] %v157_v32 }
 0x11c   :  { %289 = shalt.err (!%p286_p4)
}
 0x11d   :  { %s290_s2 = scalar_lea.hbm %s418_s3, 16 }
 0x11e   :  { %p291_p5 = scmp.ne.s32.totalorder %s418_s3, %s290_s2  ;;  %p294_p6 = scmp.lt.u32.totalorder %s290_s2, %s418_s3 }
 0x120   :  { %p296_p7 = pnand %p294_p6, %p291_p5 }
 0x122   :  { %299 = shalt.err (!%p296_p7)
}
 0x123   :  { %168 = dma.vmem_to_hbm [thread:$0]  %s166_s22, 16, %s418_s3, [#allocation4]  }
 0x124   :  { %300 = dma.done.wait [#allocation4], 16  }
 0x125   :  { %301 = vsyncadd [#allocation4], 4294967280 }
 0x126   :  { %172 = vsyncpa [#allocation4], 1 }

</bundles_post_ra>
